<compile_context>
chip_gen: v7x
topology: tpu7x:2x2x1
jax: 0.10.0
libtpu: 0.0.40
codegen_flags: <defaults>
</compile_context>

<pallas_src>
import math

import jax
import jax.numpy as jnp
from jax.experimental import pallas as pl
from jax.experimental.pallas import tpu as pltpu

LANE = 128
ROWS_TILE_MAX = 512        # rows of 128 points per grid step (multiple of 8).
                           # 512 rows -> 64K points/step, ~0.75 MiB input block +
                           # 0.25 MiB output block; ~2 MiB double-buffered total.


def _round_up(n, m):
    return ((n + m - 1) // m) * m


def _sdf_box_kernel(hs_ref, x_ref, o_ref):
    # hs_ref: SMEM (3,) f32 ; x_ref: VMEM (3, rows, 128) f32 ; o_ref: VMEM (rows, 128) f32
    hx = hs_ref[0]
    hy = hs_ref[1]
    hz = hs_ref[2]
    # Full (rows, 128) slabs per coordinate: pure VPU work at 100% vreg occupancy,
    # no cross-lane / cross-sublane XLU reductions.
    qx = jnp.abs(x_ref[0]) - hx
    qy = jnp.abs(x_ref[1]) - hy
    qz = jnp.abs(x_ref[2]) - hz
    q_max = jnp.maximum(jnp.maximum(qx, qy), qz)
    zero = jnp.zeros_like(qx)
    # where(q > 0, q, 0): exact PyTorch semantics (incl. NaN -> 0 on the false branch).
    rx = jnp.where(qx > 0.0, qx, zero)
    ry = jnp.where(qy > 0.0, qy, zero)
    rz = jnp.where(qz > 0.0, qz, zero)
    # sqrt stays on the EUP slot and overlaps with the VALU work for free.
    outside = jnp.sqrt(rx * rx + ry * ry + rz * rz)
    o_ref[...] = outside + jnp.where(q_max < 0.0, q_max, zero)


def _normalize_halfsides(halfsides):
    hs = jnp.asarray(halfsides, jnp.float32).reshape(-1)
    if hs.shape[0] == 1:                       # scalar halfsides broadcast (PyTorch semantics)
        hs = jnp.broadcast_to(hs, (3,))
    assert hs.shape == (3,), "halfsides must broadcast to 3 components"
    # TODO(synk): per-box halfsides of shape (R, 3) (used with query_positions (..., 1, 3)
    # via PyTorch broadcasting) are not supported by this single-box kernel.
    return hs


@jax.jit
def sdf_boxes_packed(x_packed, halfsides):
    """Fast path: x_packed is coords-major (3, R, 128) f32 with R a multiple of 8.

    Returns (R, 128) f32 SDF values. Pack once (pack_query_positions) and reuse the
    packed layout across many evaluations to avoid paying the relayout pass each call.
    """
    three, R, lane = x_packed.shape
    assert three == 3 and lane == LANE and R % 8 == 0
    hs = _normalize_halfsides(halfsides)

    rows_tile = min(ROWS_TILE_MAX, R)
    while R % rows_tile != 0:                  # keep a multiple-of-8 divisor of R
        rows_tile -= 8
    grid = (R // rows_tile,)

    return pl.pallas_call(
        _sdf_box_kernel,
        out_shape=jax.ShapeDtypeStruct((R, LANE), jnp.float32),
        grid_spec=pltpu.PrefetchScalarGridSpec(
            num_scalar_prefetch=1,             # halfsides -> SMEM, read as scalars
            grid=grid,
            in_specs=[pl.BlockSpec((3, rows_tile, LANE),
                                   lambda i, hs_ref: (0, i, 0))],
            out_specs=pl.BlockSpec((rows_tile, LANE),
                                   lambda i, hs_ref: (i, 0)),
        ),
        compiler_params=pltpu.CompilerParams(
            dimension_semantics=("parallel",)),
    )(hs, x_packed)


def pack_query_positions(query_positions):
    """(..., 3) -> coords-major (3, R_pad, 128) f32 suitable for sdf_boxes_packed."""
    qp32 = jnp.asarray(query_positions).astype(jnp.float32)
    *lead, d = qp32.shape
    assert d == 3, "query positions must have 3 coordinates"
    P = math.prod(lead) if lead else 1
    R = (P + LANE - 1) // LANE
    rows_tile = min(ROWS_TILE_MAX, _round_up(max(R, 1), 8))
    R_pad = _round_up(max(R, 1), rows_tile)
    x = qp32.reshape(P, 3).T                    # (3, P)
    x = jnp.pad(x, ((0, 0), (0, R_pad * LANE - P)))
    return x.reshape(3, R_pad, LANE)


@jax.jit
def sdf_boxes_pallas(query_positions, halfsides):
    """One-shot convenience wrapper: (..., 3), (3,) -> (..., 1)."""
    qp = jnp.asarray(query_positions)
    out_dtype = qp.dtype
    *lead, d = qp.shape
    assert d == 3, "query positions must have 3 coordinates"
    P = math.prod(lead) if lead else 1

    x_packed = pack_query_positions(qp)          # relayout fuses under this jit
    out = sdf_boxes_packed(x_packed, halfsides)  # (R_pad, 128)

    P_pad = out.shape[0] * LANE
    return out.reshape(P_pad)[:P].reshape(tuple(lead) + (1,)).astype(out_dtype)


if __name__ == "__main__":
    key = jax.random.PRNGKey(0)
    B, N = 2, 256                                            # 512 query points
    qp = jax.random.normal(key, (B, N, 3), dtype=jnp.float32)
    halfsides = jnp.array([0.25, 0.5, 1.0], dtype=jnp.float32)

    # Pure-JAX reference of the PyTorch SDFBoxes forward.
    q = jnp.abs(qp) - halfsides
    q_max = jnp.max(q, axis=-1, keepdims=True)
    ref = (jnp.linalg.norm(jnp.where(q > 0.0, q, 0.0), axis=-1, keepdims=True)
           + jnp.where(q_max < 0.0, q_max, 0.0))

    # One-shot convenience path.
    out = jax.block_until_ready(sdf_boxes_pallas(qp, halfsides))
    assert out.shape == ref.shape == (B, N, 1)
    assert jnp.allclose(out, ref, atol=1e-5, rtol=1e-5)

    # Pre-packed fast path (pack once, query many times).
    x_packed = jax.block_until_ready(pack_query_positions(qp))
    out_packed = jax.block_until_ready(sdf_boxes_packed(x_packed, halfsides))
    P = B * N
    out2 = out_packed.reshape(-1)[:P].reshape(B, N, 1)
    assert jnp.allclose(out2, ref, atol=1e-5, rtol=1e-5)

    print("KERNEL_OK")
</pallas_src>

<mosaic_0001>
module attributes {stable_mosaic.version = 11 : i64} {
  func.func @_sdf_box_kernel(%arg0: i32, %arg1: memref<3xf32, #tpu.memory_space<smem>>, %arg2: memref<3x8x128xf32, #tpu.memory_space<vmem>>, %arg3: memref<8x128xf32, #tpu.memory_space<vmem>>) attributes {dimension_semantics = [#tpu.dimension_semantics<parallel>], iteration_bounds = array<i64: 1>, scalar_prefetch = 1 : i64, scratch_operands = 0 : i64, tpu.core_type = #tpu.core_type<tc>, window_params = [{transform_indices = @transform_0, window_bounds = array<i64: 3, 8, 128>}, {transform_indices = @transform_1, window_bounds = array<i64: 8, 128>}]} {
    %c0 = arith.constant 0 : index
    %0 = memref.load %arg1[%c0] : memref<3xf32, #tpu.memory_space<smem>>
    %c1 = arith.constant 1 : index
    %1 = memref.load %arg1[%c1] : memref<3xf32, #tpu.memory_space<smem>>
    %c2 = arith.constant 2 : index
    %2 = memref.load %arg1[%c2] : memref<3xf32, #tpu.memory_space<smem>>
    %c0_0 = arith.constant 0 : index
    %c0_1 = arith.constant 0 : index
    %c0_2 = arith.constant 0 : index
    %3 = vector.load %arg2[%c0_0, %c0_1, %c0_2] : memref<3x8x128xf32, #tpu.memory_space<vmem>>, vector<1x8x128xf32>
    %4 = vector.shape_cast %3 : vector<1x8x128xf32> to vector<8x128xf32>
    %5 = math.absf %4 : vector<8x128xf32>
    %6 = vector.broadcast %0 : f32 to vector<8x128xf32>
    %7 = arith.subf %5, %6 : vector<8x128xf32>
    %c1_3 = arith.constant 1 : index
    %c0_4 = arith.constant 0 : index
    %c0_5 = arith.constant 0 : index
    %8 = vector.load %arg2[%c1_3, %c0_4, %c0_5] : memref<3x8x128xf32, #tpu.memory_space<vmem>>, vector<1x8x128xf32>
    %9 = vector.shape_cast %8 : vector<1x8x128xf32> to vector<8x128xf32>
    %10 = math.absf %9 : vector<8x128xf32>
    %11 = vector.broadcast %1 : f32 to vector<8x128xf32>
    %12 = arith.subf %10, %11 : vector<8x128xf32>
    %c2_6 = arith.constant 2 : index
    %c0_7 = arith.constant 0 : index
    %c0_8 = arith.constant 0 : index
    %13 = vector.load %arg2[%c2_6, %c0_7, %c0_8] : memref<3x8x128xf32, #tpu.memory_space<vmem>>, vector<1x8x128xf32>
    %14 = vector.shape_cast %13 : vector<1x8x128xf32> to vector<8x128xf32>
    %15 = math.absf %14 : vector<8x128xf32>
    %16 = vector.broadcast %2 : f32 to vector<8x128xf32>
    %17 = arith.subf %15, %16 : vector<8x128xf32>
    %18 = arith.maximumf %7, %12 : vector<8x128xf32>
    %19 = arith.maximumf %18, %17 : vector<8x128xf32>
    %cst = arith.constant 0.000000e+00 : f32
    %20 = vector.broadcast %cst : f32 to vector<8x128xf32>
    %cst_9 = arith.constant 0.000000e+00 : f32
    %21 = vector.broadcast %cst_9 : f32 to vector<8x128xf32>
    %22 = arith.cmpf ogt, %7, %21 : vector<8x128xf32>
    %23 = arith.select %22, %7, %20 : vector<8x128xi1>, vector<8x128xf32>
    %cst_10 = arith.constant 0.000000e+00 : f32
    %24 = vector.broadcast %cst_10 : f32 to vector<8x128xf32>
    %25 = arith.cmpf ogt, %12, %24 : vector<8x128xf32>
    %26 = arith.select %25, %12, %20 : vector<8x128xi1>, vector<8x128xf32>
    %cst_11 = arith.constant 0.000000e+00 : f32
    %27 = vector.broadcast %cst_11 : f32 to vector<8x128xf32>
    %28 = arith.cmpf ogt, %17, %27 : vector<8x128xf32>
    %29 = arith.select %28, %17, %20 : vector<8x128xi1>, vector<8x128xf32>
    %30 = arith.mulf %23, %23 : vector<8x128xf32>
    %31 = arith.mulf %26, %26 : vector<8x128xf32>
    %32 = arith.addf %30, %31 : vector<8x128xf32>
    %33 = arith.mulf %29, %29 : vector<8x128xf32>
    %34 = arith.addf %32, %33 : vector<8x128xf32>
    %35 = math.sqrt %34 : vector<8x128xf32>
    %cst_12 = arith.constant 0.000000e+00 : f32
    %36 = vector.broadcast %cst_12 : f32 to vector<8x128xf32>
    %37 = arith.cmpf olt, %19, %36 : vector<8x128xf32>
    %38 = arith.select %37, %19, %20 : vector<8x128xi1>, vector<8x128xf32>
    %39 = arith.addf %35, %38 : vector<8x128xf32>
    %c0_13 = arith.constant 0 : index
    %c0_14 = arith.constant 0 : index
    %40 = vector.load %arg3[%c0_13, %c0_14] : memref<8x128xf32, #tpu.memory_space<vmem>>, vector<8x128xf32>
    tpu.vector_store %arg3[%c0_13, %c0_14], %39 {strides = array<i32>} : memref<8x128xf32, #tpu.memory_space<vmem>>, vector<8x128xf32>,
    return
  }
  func.func @transform_0(%arg0: i32, %arg1: memref<3xf32, #tpu.memory_space<smem>>) -> (i32, i32, i32) {
    %c0_i32 = arith.constant 0 : i32
    %c0_i32_0 = arith.constant 0 : i32
    %c0_i32_1 = arith.constant 0 : i32
    return %c0_i32, %arg0, %c0_i32_0 : i32, i32, i32
  }
  func.func @transform_1(%arg0: i32, %arg1: memref<3xf32, #tpu.memory_space<smem>>) -> (i32, i32) {
    %c0_i32 = arith.constant 0 : i32
    %c0_i32_0 = arith.constant 0 : i32
    return %arg0, %c0_i32 : i32, i32
  }
}

</mosaic_0001>

<bundles_post_ra>
// kernel: sdf_boxes_packed.1
= control target key start
LH: loop header
LB: loop body
LE: loop exit
PB: predicated region body
PF: predicated region fallthrough
CT: control target
= control target key end

     0   :  { %s204_s0 = inlined_call_operand.vmem [shape: f32[3], index: 0, kind: input, shape index: {}]   ;;  %s205_s1 = inlined_call_operand.hbm [shape: f32[3,8,128], index: 1, kind: input, shape index: {}]   ;;  %s206_s2 = inlined_call_operand.hbm [shape: f32[8,128], index: 2, kind: output, shape index: {}]  }
   0x1   :  { %s7_s11 = sshll.u32 %s204_s0, 4  ;;  %s8_s11 = int_to_ptr.vmem [resolvable:$true] %s7_s11 }
   0x2   :  { %s95_s12 = scalar_lea.vmem %s8_s11, 16  ;;  %p100_p1 = scmp.lt.s32.totalorder %s8_s11, %s8_s11 }
   0x3   :  { %p96_p0 = scmp.ne.s32.totalorder %s8_s11, %s95_s12  ;;  %p101_p2 = scmp.lt.s32.totalorder %s95_s12, %s95_s12 }
   0x5   :  { %p102_p3 = por %p101_p2, %p100_p1 }
   0x7   :  { %p103_p4 = pnand %p102_p3, %p96_p0 }
   0x9   :  { %106 = shalt.err (!%p103_p4)  }
   0xa   :  { %s157_s13 = smov [#allocation3]  }
   0xb   :  { %10 = dma.vmem_to_smem %s8_s11, 16, %s157_s13, [#allocation2] }
   0xc   :  { %151 = dma.done.wait [#allocation2], 16 }
   0xd   :  { %152 = vsyncadd [#allocation2], 4294967280 }
   0xe   :  { %12 = sfence }
   0xf   :  { %13 = vsyncpa [#allocation5], 0 }
  0x10   :  { %14 = vsyncpa [#allocation6], 0  ;;  %s158_s14 = smov [#allocation4]   ;;  %s107_s17 = scalar_lea.hbm %s205_s1, 384 }
  0x11   :  { %s20_s15 = sshll.u32 %s158_s14, 4  ;;  %p108_p5 = scmp.ne.s32.totalorder %s205_s1, %s107_s17  ;;  %s21_s15 = int_to_ptr.vmem [resolvable:$true] %s20_s15 }
  0x12   :  { %p111_p6 = scmp.lt.u32.totalorder %s107_s17, %s205_s1 }
  0x14   :  { %p113_p7 = pnand %p111_p6, %p108_p5 }
  0x16   :  { %116 = shalt.err (!%p113_p7)
}
  0x17   :  { %s117_s22 = scalar_lea.vmem %s21_s15, 384  ;;  %p122_p9 = scmp.lt.s32.totalorder %s21_s15, %s21_s15 }
  0x18   :  { %p118_p8 = scmp.ne.s32.totalorder %s21_s15, %s117_s22  ;;  %p123_p10 = scmp.lt.s32.totalorder %s117_s22, %s117_s22 }
  0x1a   :  { %p124_p11 = por %p123_p10, %p122_p9 }
  0x1c   :  { %p125_p12 = pnand %p124_p11, %p118_p8 }
  0x1e   :  { %128 = shalt.err (!%p125_p12)
}
  0x1f   :  { %s159_s23 = smov 128   ;;  %s160_s24 = smov 8  }
  0x20   :  { %26 = dma.hbm_to_vmem [thread:$0]  %s205_s1, 384, %s21_s15, [#allocation5], %s159_s23, %s159_s23, %s160_s24  }
  0x21   :  { %153 = dma.done.wait [#allocation5], 384  }
  0x22   :  { %154 = vsyncadd [#allocation5], 4294966912  ;;  %s30_s27 = sld [smem:[#allocation3]]  ;;  %s86_s28 = sld [smem:[#allocation3 + $0x1]]  ;;  %v33_v0 = vld [vmem:[#allocation4] sm:$0xff]  ;;  %v38_v2 = vld [vmem:[#allocation4 + $0x8] sm:$0xff] }
  0x23   :  { %s87_s29 = sld [smem:[#allocation3 + $0x2]]  ;;  %v43_v4 = vld [vmem:[#allocation4 + $0x10] sm:$0xff]  ;;  %v34_v5 = vand.u32 2147483647, %v33_v0  ;;  %v39_v6 = vand.u32 2147483647, %v38_v2 }
  0x24   :  { %v44_v7 = vand.u32 2147483647, %v43_v4  ;;  %s161_s1 = smov [#allocation7]  }
  0x25   :  { %s77_s30 = sshll.u32 %s161_s1, 4  ;;  %s78_s30 = int_to_ptr.vmem [resolvable:$true] %s77_s30 }
  0x26   :  { %s129_s3 = scalar_lea.vmem %s78_s30, 128  ;;  %p134_p0 = scmp.lt.s32.totalorder %s78_s30, %s78_s30 }
  0x27   :  { %p130_p13 = scmp.ne.s32.totalorder %s78_s30, %s129_s3  ;;  %p135_p1 = scmp.lt.s32.totalorder %s129_s3, %s129_s3 }
  0x28   :  { %v35_v1 = vstv %s30_s27  ;;  %v40_v3 = vstv %s86_s28 }
  0x29   :  { %v45_v8 = vstv %s87_s29  ;;  %v36_v9 = vsub.f32 %v34_v5, %v35_v1  ;;  %v41_v10 = vsub.f32 %v39_v6, %v40_v3  ;;  %p136_p2 = por %p135_p1, %p134_p0 }
  0x2a   :  { %v46_v11 = vsub.f32 %v44_v7, %v45_v8 }
  0x2b   :  { %vm49_vm0 = vcmp.gt.f32.partialorder %v36_v9, 0.0  ;;  %vm51_vm1 = vcmp.gt.f32.partialorder %v41_v10, 0.0  ;;  %v47_v20 = vmax.f32 %v36_v9, %v41_v10  ;;  %p137_p3 = pnand %p136_p2, %p130_p13 }
  0x2c   :  { %vm53_vm2 = vcmp.gt.f32.partialorder %v46_v11, 0.0  ;;  %v50_v12 = vsel %vm49_vm0, %v36_v9, 0.0  ;;  %v52_v13 = vsel %vm51_vm1, %v41_v10, 0.0 }
  0x2d   :  { %v54_v14 = vsel %vm53_vm2, %v46_v11, 0.0  ;;  %v55_v15 = vmul.f32 %v50_v12, %v50_v12  ;;  %v56_v16 = vmul.f32 %v52_v13, %v52_v13  ;;  %v48_v21 = vmax.f32 %v47_v20, %v46_v11 }
  0x2e   :  { %v58_v17 = vmul.f32 %v54_v14, %v54_v14 }
  0x2f   :  { %v57_v18 = vadd.f32 %v56_v16, %v55_v15  ;;  %vm67_vm3 = vcmp.lt.f32.partialorder %v48_v21, 0.0 }
  0x30   :  { %v68_v25 = vsel %vm67_vm3, %v48_v21, 0.0 }
  0x31   :  { %v59_v19 = vadd.f32 %v58_v17, %v57_v18 }
  0x33   :  { %93 = vrsqrt.f32 %v59_v19  ;;  %vm62_vm4 = vcmp.eq.f32.partialorder %v59_v19, inf  ;;  %v65_v23 = vand.u32 2147483648, %v59_v19  ;;  %vm64_vm5 = vcmp.eq.f32.partialorder %v59_v19, 0.0 }
  0x3d   :  { %v94_v22 = vpop.eup %93 }
  0x3e   :  { %v61_v24 = vmul.f32 %v94_v22, %v59_v19 }
  0x40   :  { %v63_v26 = vsel %vm62_vm4, %v59_v19, %v61_v24 }
  0x41   :  { %v66_v27 = vsel %vm64_vm5, %v65_v23, %v63_v26 }
  0x42   :  { %v69_v28 = vadd.f32 %v68_v25, %v66_v27 }
  0x44   :  { %70 = vst [vmem:[#allocation7] sm:$0xff] %v69_v28 }
  0x45   :  { %140 = shalt.err (!%p137_p3)
}
  0x46   :  { %s141_s6 = scalar_lea.hbm %s206_s2, 128 }
  0x47   :  { %p142_p4 = scmp.ne.s32.totalorder %s206_s2, %s141_s6  ;;  %p145_p5 = scmp.lt.u32.totalorder %s141_s6, %s206_s2 }
  0x49   :  { %p147_p6 = pnand %p145_p5, %p142_p4 }
  0x4b   :  { %150 = shalt.err (!%p147_p6)
}
  0x4c   :  { %80 = dma.vmem_to_hbm [thread:$0]  %s78_s30, 128, %s206_s2, [#allocation6]  }
  0x4d   :  { %155 = dma.done.wait [#allocation6], 128  }
  0x4e   :  { %156 = vsyncadd [#allocation6], 4294967168 }
  0x4f   :  { %84 = vsyncpa [#allocation5], 1 }
  0x50   :  { %85 = vsyncpa [#allocation6], 1 }

</bundles_post_ra>
